<compile_context>
chip_gen: v6e
topology: v6e:2x2x1
jax: 0.10.0
libtpu: 0.0.40
codegen_flags: <defaults>
</compile_context>

<pallas_src>
import functools

import jax
import jax.numpy as jnp
from jax.experimental import pallas as pl
from jax.experimental.pallas import tpu as pltpu

_HIDDEN = 128
_LANE = 128      # vreg lane width
_SUBLANE = 8     # f32 sublane count


def _round_up(n, m):
    return ((n + m - 1) // m) * m


def _mlp_kernel(x_ref, w1_ref, b1_ref, w2_ref, b2_ref, w3_ref, b3_ref, o_ref):
    """One (tb, obs_dim) batch tile of the fused 3-layer MLP (all f32, MXU acc in f32)."""
    h1 = jnp.dot(x_ref[...], w1_ref[...],
                 preferred_element_type=jnp.float32) + b1_ref[...]
    h1 = jnp.maximum(h1, 0.0)                                   # ReLU (VPU)

    h2 = jnp.dot(h1, w2_ref[...],
                 preferred_element_type=jnp.float32) + b2_ref[...]
    h2 = jnp.maximum(h2, 0.0)                                   # ReLU (VPU)

    out = jnp.dot(h2, w3_ref[...],
                  preferred_element_type=jnp.float32) + b3_ref[...]
    o_ref[...] = out.astype(o_ref.dtype)


def _choose_batch_tile(B, max_batch_tile):
    """Tiny B -> one exact block; otherwise aim for >=2 roughly equal grid steps
    (balanced across both v7x TensorCores), capped at max_batch_tile."""
    if B <= _SUBLANE:
        return B                                     # block == full array dim (legal)
    half = _round_up(pl.cdiv(B, 2), _SUBLANE)
    return min(max_batch_tile, half)


def speaker_qnetwork_forward(x, params, *, action_dim, max_batch_tile=1024):
    """x: (B, obs_dim) float. params: dict from init_params (w3/b3 already lane-padded)."""
    w1, b1, w2, b2, w3, b3 = (params[k] for k in ("w1", "b1", "w2", "b2", "w3", "b3"))
    B, obs_dim = x.shape
    hidden = w1.shape[1]
    act_pad = w3.shape[1]             # lane-dense (multiple of 128), padded in init_params

    if B == 0:                        # guard empty batch (avoids tb == 0)
        return jnp.zeros((0, action_dim), jnp.float32)

    x = x.astype(jnp.float32)         # no-op when already f32
    tb = _choose_batch_tile(B, max_batch_tile)
    grid = (pl.cdiv(B, tb),)          # ragged last tile masked by Pallas, no batch padding

    cost = pl.CostEstimate(
        flops=2 * B * (obs_dim * hidden + hidden * hidden + hidden * act_pad),
        transcendentals=0,
        bytes_accessed=4 * (B * obs_dim
                            + obs_dim * hidden + hidden * hidden + hidden * act_pad
                            + 2 * hidden + act_pad
                            + B * act_pad),
    )

    # Weights/biases: same block every grid step -> fetched once, VMEM-resident.
    def resident(shape):
        return pl.BlockSpec(shape, lambda i: (0, 0))

    # Per-step VMEM: double-buffered x/out tiles + (double-buffered) resident weights.
    vmem_bytes = 4 * (2 * tb * (obs_dim + act_pad)
                      + 2 * (obs_dim * hidden + hidden * hidden + hidden * act_pad
                             + 2 * hidden + act_pad))
    compiler_kwargs = dict(dimension_semantics=("parallel",))   # megacore sharding on v7x
    if vmem_bytes > 14 * 1024 * 1024:
        # Only reachable if max_batch_tile is pushed far beyond the default; keeps the
        # kernel compiling on v5e's 16 MiB default scoped-VMEM limit.
        compiler_kwargs["vmem_limit_bytes"] = min(vmem_bytes + (4 << 20), 100 << 20)

    out_p = pl.pallas_call(
        _mlp_kernel,
        out_shape=jax.ShapeDtypeStruct((B, act_pad), jnp.float32),
        grid=grid,
        in_specs=[
            pl.BlockSpec((tb, obs_dim), lambda i: (i, 0)),   # x: one batch tile / step
            resident((obs_dim, hidden)),                     # w1 (no padding needed)
            resident((1, hidden)),                           # b1
            resident((hidden, hidden)),                      # w2
            resident((1, hidden)),                           # b2
            resident((hidden, act_pad)),                     # w3 (lane-dense padded)
            resident((1, act_pad)),                          # b3 (lane-dense padded)
        ],
        out_specs=pl.BlockSpec((tb, act_pad), lambda i: (i, 0)),
        compiler_params=pltpu.CompilerParams(**compiler_kwargs),
        cost_estimate=cost,
    )(x, w1, b1, w2, b2, w3, b3)

    # Padded action columns are exactly zero (zero w3 cols + zero b3 cols); slice them
    # off.  Call this function under jax.jit so the slice fuses with surrounding ops.
    return out_p[:, :action_dim]


def init_params(key, obs_dim, action_dim, hidden=_HIDDEN):
    """nn.Linear-style init (uniform +/- 1/sqrt(fan_in)).  All per-call constant prep
    (lane-dense padding of the output layer, (1, out) bias shapes) is done ONCE here."""
    ks = jax.random.split(key, 6)

    def lin(kw, kb, fan_in, fan_out):
        bound = 1.0 / (fan_in ** 0.5)
        w = jax.random.uniform(kw, (fan_in, fan_out), jnp.float32, -bound, bound)
        b = jax.random.uniform(kb, (1, fan_out), jnp.float32, -bound, bound)
        return w, b

    w1, b1 = lin(ks[0], ks[1], obs_dim, hidden)
    w2, b2 = lin(ks[2], ks[3], hidden, hidden)
    w3, b3 = lin(ks[4], ks[5], hidden, action_dim)

    act_pad = _round_up(action_dim, _LANE)   # lane-dense final layer -> unmasked stores
    w3_p = jnp.zeros((hidden, act_pad), jnp.float32).at[:, :action_dim].set(w3)
    b3_p = jnp.zeros((1, act_pad), jnp.float32).at[:, :action_dim].set(b3)
    return {"w1": w1, "b1": b1, "w2": w2, "b2": b2, "w3": w3_p, "b3": b3_p}


def reference_forward(x, params, action_dim):
    """Pure-JAX f32 reference of the same math (padded w3/b3 columns are zero)."""
    h1 = jnp.maximum(x.astype(jnp.float32) @ params["w1"] + params["b1"], 0.0)
    h2 = jnp.maximum(h1 @ params["w2"] + params["b2"], 0.0)
    return (h2 @ params["w3"] + params["b3"])[:, :action_dim]


if __name__ == "__main__":
    key = jax.random.PRNGKey(0)
    k_param, k_x, k_xl = jax.random.split(key, 3)

    # simple_speaker_listener speaker agent: obs_dim=3 (goal color), action_dim=3
    batch, obs_dim, action_dim = 2, 3, 3

    params = init_params(k_param, obs_dim, action_dim)
    fwd = jax.jit(functools.partial(speaker_qnetwork_forward, action_dim=action_dim))

    # --- small batch: single exact (B, obs_dim) block, grid=(1,) --------------------
    x = jax.random.normal(k_x, (batch, obs_dim), jnp.float32)
    out = jax.block_until_ready(fwd(x, params))
    ref = reference_forward(x, params, action_dim)
    assert out.shape == (batch, action_dim)
    assert jnp.allclose(out, ref, atol=1e-4, rtol=1e-4), "small-batch mismatch"

    # --- larger batch: balanced 2-step grid (tb=304 -> tiles 304 + ragged 296), no
    # wrapper-side batch padding -------------------------------------------------------
    xl = jax.random.normal(k_xl, (600, obs_dim), jnp.float32)
    out_l = jax.block_until_ready(fwd(xl, params))
    ref_l = reference_forward(xl, params, action_dim)
    assert out_l.shape == (600, action_dim)
    assert jnp.allclose(out_l, ref_l, atol=1e-4, rtol=1e-4), "ragged-batch mismatch"

    print("KERNEL_OK")
</pallas_src>

<mosaic_0001>
module attributes {stable_mosaic.version = 11 : i64} {
  func.func @_mlp_kernel(%arg0: i32, %arg1: memref<2x3xf32, #tpu.memory_space<vmem>>, %arg2: memref<3x128xf32, #tpu.memory_space<vmem>>, %arg3: memref<1x128xf32, #tpu.memory_space<vmem>>, %arg4: memref<128x128xf32, #tpu.memory_space<vmem>>, %arg5: memref<1x128xf32, #tpu.memory_space<vmem>>, %arg6: memref<128x128xf32, #tpu.memory_space<vmem>>, %arg7: memref<1x128xf32, #tpu.memory_space<vmem>>, %arg8: memref<2x128xf32, #tpu.memory_space<vmem>>) attributes {dimension_semantics = [#tpu.dimension_semantics<parallel>], iteration_bounds = array<i64: 1>, scalar_prefetch = 0 : i64, scratch_operands = 0 : i64, tpu.core_type = #tpu.core_type<tc>, window_params = [{transform_indices = @transform_0, window_bounds = array<i64: 2, 3>}, {pipeline_mode = #tpu.pipeline_mode<synchronous>, transform_indices = @transform_1, window_bounds = array<i64: 3, 128>}, {pipeline_mode = #tpu.pipeline_mode<synchronous>, transform_indices = @transform_2, window_bounds = array<i64: 1, 128>}, {pipeline_mode = #tpu.pipeline_mode<synchronous>, transform_indices = @transform_3, window_bounds = array<i64: 128, 128>}, {pipeline_mode = #tpu.pipeline_mode<synchronous>, transform_indices = @transform_4, window_bounds = array<i64: 1, 128>}, {pipeline_mode = #tpu.pipeline_mode<synchronous>, transform_indices = @transform_5, window_bounds = array<i64: 128, 128>}, {pipeline_mode = #tpu.pipeline_mode<synchronous>, transform_indices = @transform_6, window_bounds = array<i64: 1, 128>}, {transform_indices = @transform_7, window_bounds = array<i64: 2, 128>}]} {
    %c0 = arith.constant 0 : index
    %c0_0 = arith.constant 0 : index
    %0 = vector.load %arg1[%c0, %c0_0] : memref<2x3xf32, #tpu.memory_space<vmem>>, vector<2x3xf32>
    %c0_1 = arith.constant 0 : index
    %c0_2 = arith.constant 0 : index
    %1 = vector.load %arg2[%c0_1, %c0_2] : memref<3x128xf32, #tpu.memory_space<vmem>>, vector<3x128xf32>
    %cst = arith.constant dense<0.000000e+00> : vector<2x128xf32>
    %2 = tpu.matmul %0, %1, %cst {dimension_numbers = #tpu.dot_dimension_numbers<[1], [0], [0], [1], [0, 0, 1, 1], [], []>} : vector<2x3xf32>, vector<3x128xf32>, vector<2x128xf32> -> vector<2x128xf32>
    %c0_3 = arith.constant 0 : index
    %c0_4 = arith.constant 0 : index
    %3 = vector.load %arg3[%c0_3, %c0_4] : memref<1x128xf32, #tpu.memory_space<vmem>>, vector<1x128xf32>
    %4 = vector.broadcast %3 : vector<1x128xf32> to vector<2x128xf32>
    %5 = arith.addf %2, %4 : vector<2x128xf32>
    %cst_5 = arith.constant 0.000000e+00 : f32
    %6 = vector.broadcast %cst_5 : f32 to vector<2x128xf32>
    %7 = arith.maximumf %5, %6 : vector<2x128xf32>
    %c0_6 = arith.constant 0 : index
    %c0_7 = arith.constant 0 : index
    %8 = vector.load %arg4[%c0_6, %c0_7] : memref<128x128xf32, #tpu.memory_space<vmem>>, vector<128x128xf32>
    %cst_8 = arith.constant dense<0.000000e+00> : vector<2x128xf32>
    %9 = tpu.matmul %7, %8, %cst_8 {dimension_numbers = #tpu.dot_dimension_numbers<[1], [0], [0], [1], [0, 0, 1, 1], [], []>} : vector<2x128xf32>, vector<128x128xf32>, vector<2x128xf32> -> vector<2x128xf32>
    %c0_9 = arith.constant 0 : index
    %c0_10 = arith.constant 0 : index
    %10 = vector.load %arg5[%c0_9, %c0_10] : memref<1x128xf32, #tpu.memory_space<vmem>>, vector<1x128xf32>
    %11 = vector.broadcast %10 : vector<1x128xf32> to vector<2x128xf32>
    %12 = arith.addf %9, %11 : vector<2x128xf32>
    %cst_11 = arith.constant 0.000000e+00 : f32
    %13 = vector.broadcast %cst_11 : f32 to vector<2x128xf32>
    %14 = arith.maximumf %12, %13 : vector<2x128xf32>
    %c0_12 = arith.constant 0 : index
    %c0_13 = arith.constant 0 : index
    %15 = vector.load %arg6[%c0_12, %c0_13] : memref<128x128xf32, #tpu.memory_space<vmem>>, vector<128x128xf32>
    %cst_14 = arith.constant dense<0.000000e+00> : vector<2x128xf32>
    %16 = tpu.matmul %14, %15, %cst_14 {dimension_numbers = #tpu.dot_dimension_numbers<[1], [0], [0], [1], [0, 0, 1, 1], [], []>} : vector<2x128xf32>, vector<128x128xf32>, vector<2x128xf32> -> vector<2x128xf32>
    %c0_15 = arith.constant 0 : index
    %c0_16 = arith.constant 0 : index
    %17 = vector.load %arg7[%c0_15, %c0_16] : memref<1x128xf32, #tpu.memory_space<vmem>>, vector<1x128xf32>
    %18 = vector.broadcast %17 : vector<1x128xf32> to vector<2x128xf32>
    %19 = arith.addf %16, %18 : vector<2x128xf32>
    %c0_17 = arith.constant 0 : index
    %c0_18 = arith.constant 0 : index
    %20 = vector.load %arg8[%c0_17, %c0_18] : memref<2x128xf32, #tpu.memory_space<vmem>>, vector<2x128xf32>
    tpu.vector_store %arg8[%c0_17, %c0_18], %19 {strides = array<i32>} : memref<2x128xf32, #tpu.memory_space<vmem>>, vector<2x128xf32>,
    return
  }
  func.func @transform_0(%arg0: i32) -> (i32, i32) {
    %c0_i32 = arith.constant 0 : i32
    %c0_i32_0 = arith.constant 0 : i32
    return %arg0, %c0_i32 : i32, i32
  }
  func.func @transform_1(%arg0: i32) -> (i32, i32) {
    %c0_i32 = arith.constant 0 : i32
    %c0_i32_0 = arith.constant 0 : i32
    %c0_i32_1 = arith.constant 0 : i32
    return %c0_i32, %c0_i32_0 : i32, i32
  }
  func.func @transform_2(%arg0: i32) -> (i32, i32) {
    %c0_i32 = arith.constant 0 : i32
    %c0_i32_0 = arith.constant 0 : i32
    %c0_i32_1 = arith.constant 0 : i32
    return %c0_i32, %c0_i32_0 : i32, i32
  }
  func.func @transform_3(%arg0: i32) -> (i32, i32) {
    %c0_i32 = arith.constant 0 : i32
    %c0_i32_0 = arith.constant 0 : i32
    %c0_i32_1 = arith.constant 0 : i32
    return %c0_i32, %c0_i32_0 : i32, i32
  }
  func.func @transform_4(%arg0: i32) -> (i32, i32) {
    %c0_i32 = arith.constant 0 : i32
    %c0_i32_0 = arith.constant 0 : i32
    %c0_i32_1 = arith.constant 0 : i32
    return %c0_i32, %c0_i32_0 : i32, i32
  }
  func.func @transform_5(%arg0: i32) -> (i32, i32) {
    %c0_i32 = arith.constant 0 : i32
    %c0_i32_0 = arith.constant 0 : i32
    %c0_i32_1 = arith.constant 0 : i32
    return %c0_i32, %c0_i32_0 : i32, i32
  }
  func.func @transform_6(%arg0: i32) -> (i32, i32) {
    %c0_i32 = arith.constant 0 : i32
    %c0_i32_0 = arith.constant 0 : i32
    %c0_i32_1 = arith.constant 0 : i32
    return %c0_i32, %c0_i32_0 : i32, i32
  }
  func.func @transform_7(%arg0: i32) -> (i32, i32) {
    %c0_i32 = arith.constant 0 : i32
    %c0_i32_0 = arith.constant 0 : i32
    return %arg0, %c0_i32 : i32, i32
  }
}

</mosaic_0001>

<bundles_post_ra>
// kernel: speaker_qnetwork_forward.1
= control target key start
LH: loop header
LB: loop body
LE: loop exit
PB: predicated region body
PF: predicated region fallthrough
CT: control target
= control target key end

     0   :  { %12 = vsyncpa [#allocation3], 0  ;;  %s679_s0 = inlined_call_operand.hbm [shape: f32[2,3], index: 0, kind: input, shape index: {}]   ;;  %s680_s1 = inlined_call_operand.vmem [shape: f32[3,128], index: 1, kind: input, shape index: {}]   ;;  %s681_s2 = inlined_call_operand.vmem [shape: f32[1,128], index: 2, kind: input, shape index: {}]   ;;  %s682_s3 = inlined_call_operand.hbm [shape: f32[128,128], index: 3, kind: input, shape index: {}]   ;;  %s683_s4 = inlined_call_operand.vmem [shape: f32[1,128], index: 4, kind: input, shape index: {}]   ;;  %s684_s5 = inlined_call_operand.hbm [shape: f32[128,128], index: 5, kind: input, shape index: {}]   ;;  %s685_s6 = inlined_call_operand.vmem [shape: f32[1,128], index: 6, kind: input, shape index: {}]   ;;  %s686_s7 = inlined_call_operand.hbm [shape: f32[2,128], index: 7, kind: output, shape index: {}]  }
   0x1   :  { %13 = vsyncpa [#allocation6], 0 }
   0x2   :  { %14 = vsyncpa [#allocation4], 0  ;;  %s568_s24 = smov [#allocation5]  }
   0x3   :  { %s34_s25 = sshll.u32 %s568_s24, 4  ;;  %s35_s25 = int_to_ptr.vmem [resolvable:$true] %s34_s25 }
   0x4   :  { %s490_s26 = scalar_lea.vmem %s35_s25, 2048  ;;  %p495_p1 = scmp.lt.s32.totalorder %s35_s25, %s35_s25 }
   0x5   :  { %p491_p0 = scmp.ne.s32.totalorder %s35_s25, %s490_s26  ;;  %p496_p2 = scmp.lt.s32.totalorder %s490_s26, %s490_s26 }
   0x7   :  { %p497_p3 = por %p496_p2, %p495_p1 }
   0x9   :  { %p498_p4 = pnand %p497_p3, %p491_p0 }
   0xb   :  { %501 = shalt.err (!%p498_p4)
}
   0xc   :  { %s569_s27 = smov 128   ;;  %s570_s28 = smov 8  }
   0xd   :  { %40 = dma.hbm_to_vmem [thread:$0]  %s682_s3, 2048, %s35_s25, [#allocation6], %s569_s27, %s569_s27, %s570_s28  }
   0xe   :  { %s571_s8 = smov [#allocation2]   ;;  %s572_s10 = smov [#allocation7]  }
   0xf   :  { %s21_s9 = sshll.u32 %s571_s8, 4  ;;  %s48_s11 = sshll.u32 %s572_s10, 4  ;;  %s22_s9 = int_to_ptr.vmem [resolvable:$true] %s21_s9  ;;  %s49_s11 = int_to_ptr.vmem [resolvable:$true] %s48_s11 }
  0x10   :  { %s510_s12 = scalar_lea.vmem %s22_s9, 32  ;;  %p515_p6 = scmp.lt.s32.totalorder %s22_s9, %s22_s9 }
  0x11   :  { %p511_p5 = scmp.ne.s32.totalorder %s22_s9, %s510_s12  ;;  %p516_p7 = scmp.lt.s32.totalorder %s510_s12, %s510_s12 }
  0x13   :  { %p517_p8 = por %p516_p7, %p515_p6 }
  0x15   :  { %p518_p9 = pnand %p517_p8, %p511_p5 }
  0x17   :  { %521 = shalt.err (!%p518_p9)
}
  0x18   :  { %24 = dma.hbm_to_vmem [thread:$0]  %s679_s0, 32, %s22_s9, [#allocation3]  }
  0x19   :  { %s530_s15 = scalar_lea.vmem %s49_s11, 2048  ;;  %p535_p11 = scmp.lt.s32.totalorder %s49_s11, %s49_s11 }
  0x1a   :  { %p531_p10 = scmp.ne.s32.totalorder %s49_s11, %s530_s15  ;;  %p536_p12 = scmp.lt.s32.totalorder %s530_s15, %s530_s15 }
  0x1c   :  { %p537_p13 = por %p536_p12, %p535_p11 }
  0x1e   :  { %p538_p0 = pnand %p537_p13, %p531_p10 }
  0x20   :  { %541 = shalt.err (!%p538_p0)
}
  0x21   :  { %54 = dma.hbm_to_vmem [thread:$0]  %s684_s5, 2048, %s49_s11, [#allocation6], %s569_s27, %s569_s27, %s570_s28  }
  0x22   :  { %562 = dma.done.wait [#allocation3], 32  }
  0x23   :  { %563 = vsyncadd [#allocation3], 4294967264 }
  0x24   :  { %564 = dma.done.wait [#allocation6], 4096  }
  0x25   :  { %565 = vsyncadd [#allocation6], 4294963200  ;;  %v573_v0 = vmov 0.0   ;;  %vm574_vm0 = vmmov 0   ;;  %vm79_vm1 = vcmask 1042432   ;;  %vm75_vm2 = vcmask 23552  }
  0x26   :  { %399 = vmatprep.subr.mxu0 %v573_v0  ;;  %401 = vmatprep.mubr.msk.f32.mxu0 %vm574_vm0, %v573_v0  ;;  %v67_v1 = vld [vmem:[%s680_s1] sm:$0x7]  ;;  %v168_v4 = vld [vmem:[#allocation5 + $0x70] sm:$0xff]  ;;  %v167_v5 = vld [vmem:[#allocation5 + $0x68] sm:$0xff]  ;;  %s575_s21 = smov [#allocation8]  }
  0x27   :  { %404 = vmatprep.subr.mxu1 %v573_v0  ;;  %436 = vmatprep.mubr.msk.f32.mxu1 %vm574_vm0, %v573_v0  ;;  %v66_v2 = vld [vmem:[#allocation2] sm:$0x3]  ;;  %v166_v6 = vld [vmem:[#allocation5 + $0x60] sm:$0xff]  ;;  %v164_v8 = vld [vmem:[#allocation5 + $0x50] sm:$0xff]  ;;  %s348_s22 = sshll.u32 %s575_s21, 4  ;;  %s349_s22 = int_to_ptr.vmem [resolvable:$true] %s348_s22 }
  0x28   :  { %v169_v3 = vld [vmem:[#allocation5 + $0x78] sm:$0xff]  ;;  %400 = vmatpush3.msk.msra.mxu0 %vm79_vm1, %v67_v1  ;;  %v163_v9 = vld [vmem:[#allocation5 + $0x48] sm:$0xff]  ;;  %v162_v10 = vld [vmem:[#allocation5 + $0x40] sm:$0xff]  ;;  %s542_s23 = scalar_lea.vmem %s349_s22, 32  ;;  %p547_p2 = scmp.lt.s32.totalorder %s349_s22, %s349_s22 }
  0x29   :  { %405 = vmatpush3.msra.mxu1 %v169_v3  ;;  %402 = vmatmul.mubr.msk.f32.vlgmr.msra.gmra.mxu0 %vm75_vm2, %v66_v2  ;;  %v165_v7 = vld [vmem:[#allocation5 + $0x58] sm:$0xff]  ;;  %v160_v12 = vld [vmem:[#allocation5 + $0x30] sm:$0xff]  ;;  %v159_v13 = vld [vmem:[#allocation5 + $0x28] sm:$0xff]  ;;  %p543_p1 = scmp.ne.s32.totalorder %s349_s22, %s542_s23  ;;  %p548_p3 = scmp.lt.s32.totalorder %s542_s23, %s542_s23 }
  0x2a   :  { %406 = vmatprep.subr.mxu1 %v573_v0  ;;  %439 = vmatprep.subr.mxu0 %v573_v0  ;;  %v161_v11 = vld [vmem:[#allocation5 + $0x38] sm:$0xff]  ;;  %v158_v14 = vld [vmem:[#allocation5 + $0x20] sm:$0xff]  ;;  %v156_v16 = vld [vmem:[#allocation5 + $0x10] sm:$0xff] }
  0x2b   :  { %407 = vmatpush3.msra.mxu1 %v168_v4  ;;  %471 = vmatprep.mubr.msk.f32.mxu0 %vm574_vm0, %v573_v0  ;;  %v157_v15 = vld [vmem:[#allocation5 + $0x18] sm:$0xff]  ;;  %v155_v17 = vld [vmem:[#allocation5 + $0x8] sm:$0xff]  ;;  %v154_v18 = vld [vmem:[#allocation5] sm:$0xff]  ;;  %p549_p4 = por %p548_p3, %p547_p2 }
  0x2c   :  { %408 = vmatprep.subr.mxu1 %v573_v0  ;;  %v263_v19 = vld [vmem:[#allocation7 + $0x78] sm:$0xff]  ;;  %v262_v20 = vld [vmem:[#allocation7 + $0x70] sm:$0xff]  ;;  %v261_v21 = vld [vmem:[#allocation7 + $0x68] sm:$0xff] }
  0x2d   :  { %409 = vmatpush3.msra.mxu1 %v167_v5  ;;  %440 = vmatpush3.msra.mxu0 %v263_v19  ;;  %v260_v22 = vld [vmem:[#allocation7 + $0x60] sm:$0xff]  ;;  %v259_v23 = vld [vmem:[#allocation7 + $0x58] sm:$0xff]  ;;  %v258_v24 = vld [vmem:[#allocation7 + $0x50] sm:$0xff]  ;;  %p550_p5 = pnand %p549_p4, %p543_p1 }
  0x2e   :  { %410 = vmatprep.subr.mxu1 %v573_v0  ;;  %441 = vmatprep.subr.mxu0 %v573_v0  ;;  %v257_v25 = vld [vmem:[#allocation7 + $0x48] sm:$0xff]  ;;  %v256_v26 = vld [vmem:[#allocation7 + $0x40] sm:$0xff]  ;;  %v255_v27 = vld [vmem:[#allocation7 + $0x38] sm:$0xff] }
  0x2f   :  { %411 = vmatpush3.msra.mxu1 %v166_v6  ;;  %442 = vmatpush3.msra.mxu0 %v262_v20  ;;  %v254_v28 = vld [vmem:[#allocation7 + $0x30] sm:$0xff]  ;;  %v253_v29 = vld [vmem:[#allocation7 + $0x28] sm:$0xff]  ;;  %v252_v30 = vld [vmem:[#allocation7 + $0x20] sm:$0xff] }
  0x30   :  { %412 = vmatprep.subr.mxu1 %v573_v0  ;;  %443 = vmatprep.subr.mxu0 %v573_v0  ;;  %v251_v31 = vld [vmem:[#allocation7 + $0x18] sm:$0xff]  ;;  %v250_v37 = vld [vmem:[#allocation7 + $0x10] sm:$0xff]  ;;  %v249_v38 = vld [vmem:[#allocation7 + $0x8] sm:$0xff] }
  0x31   :  { %413 = vmatpush3.msra.mxu1 %v165_v7  ;;  %444 = vmatpush3.msra.mxu0 %v261_v21  ;;  %v358_v32 = vld [vmem:[%s681_s2] ss:$0 sm:$0xff]  ;;  %v248_v39 = vld [vmem:[#allocation7] sm:$0xff] }
  0x32   :  { %414 = vmatprep.subr.mxu1 %v573_v0  ;;  %445 = vmatprep.subr.mxu0 %v573_v0  ;;  %v361_v40 = vld [vmem:[%s683_s4] ss:$0 sm:$0xff] }
  0x33   :  { %415 = vmatpush3.msra.mxu1 %v164_v8  ;;  %446 = vmatpush3.msra.mxu0 %v260_v22  ;;  %v362_v45 = vld [vmem:[%s685_s6] ss:$0 sm:$0xff] }
  0x34   :  { %416 = vmatprep.subr.mxu1 %v573_v0  ;;  %447 = vmatprep.subr.mxu0 %v573_v0 }
  0x35   :  { %417 = vmatpush3.msra.mxu1 %v163_v9  ;;  %448 = vmatpush3.msra.mxu0 %v259_v23 }
  0x36   :  { %418 = vmatprep.subr.mxu1 %v573_v0  ;;  %449 = vmatprep.subr.mxu0 %v573_v0 }
  0x37   :  { %419 = vmatpush3.msra.mxu1 %v162_v10  ;;  %450 = vmatpush3.msra.mxu0 %v258_v24 }
  0x38   :  { %420 = vmatprep.subr.mxu1 %v573_v0  ;;  %451 = vmatprep.subr.mxu0 %v573_v0 }
  0x39   :  { %421 = vmatpush3.msra.mxu1 %v161_v11  ;;  %452 = vmatpush3.msra.mxu0 %v257_v25 }
  0x3a   :  { %422 = vmatprep.subr.mxu1 %v573_v0  ;;  %453 = vmatprep.subr.mxu0 %v573_v0 }
  0x3b   :  { %423 = vmatpush3.msra.mxu1 %v160_v12  ;;  %454 = vmatpush3.msra.mxu0 %v256_v26 }
  0x3c   :  { %424 = vmatprep.subr.mxu1 %v573_v0  ;;  %455 = vmatprep.subr.mxu0 %v573_v0 }
  0x3d   :  { %425 = vmatpush3.msra.mxu1 %v159_v13  ;;  %456 = vmatpush3.msra.mxu0 %v255_v27 }
  0x3e   :  { %426 = vmatprep.subr.mxu1 %v573_v0  ;;  %457 = vmatprep.subr.mxu0 %v573_v0 }
  0x3f   :  { %427 = vmatpush3.msra.mxu1 %v158_v14  ;;  %458 = vmatpush3.msra.mxu0 %v254_v28 }
  0x40   :  { %428 = vmatprep.subr.mxu1 %v573_v0  ;;  %459 = vmatprep.subr.mxu0 %v573_v0 }
  0x41   :  { %429 = vmatpush3.msra.mxu1 %v157_v15  ;;  %460 = vmatpush3.msra.mxu0 %v253_v29 }
  0x42   :  { %430 = vmatprep.subr.mxu1 %v573_v0  ;;  %461 = vmatprep.subr.mxu0 %v573_v0 }
  0x43   :  { %431 = vmatpush3.msra.mxu1 %v156_v16  ;;  %462 = vmatpush3.msra.mxu0 %v252_v30 }
  0x44   :  { %432 = vmatprep.subr.mxu1 %v573_v0  ;;  %463 = vmatprep.subr.mxu0 %v573_v0 }
  0x45   :  { %433 = vmatpush3.msra.mxu1 %v155_v17  ;;  %464 = vmatpush3.msra.mxu0 %v251_v31 }
  0x46   :  { %434 = vmatprep.subr.mxu1 %v573_v0  ;;  %465 = vmatprep.subr.mxu0 %v573_v0 }
  0x47   :  { %435 = vmatpush3.msra.mxu1 %v154_v18  ;;  %466 = vmatpush3.msra.mxu0 %v250_v37 }
  0x48   :  { %467 = vmatprep.subr.mxu0 %v573_v0 }
  0x49   :  { %468 = vmatpush3.msra.mxu0 %v249_v38 }
  0x4a   :  { %469 = vmatprep.subr.mxu0 %v573_v0 }
  0x4b   :  { %470 = vmatpush3.msra.mxu0 %v248_v39 }
  0xe9   :  { %v149_v33 = vpop.f32.mrf.mxu0 }
  0xea   :  { %v150_v34 = vadd.f32 %v358_v32, %v149_v33 }
  0xeb   :  { %v403_v35 = vpop.f32.mrf.mxu0 }
  0xec   :  { %v153_v36 = vmax.f32 %v150_v34, 0.0 }
  0xee   :  { %437 = vmatmul.mubr.f32.vlgmr.msra.gmra.mxu1 %v153_v36 }
 0x1ae   :  { %v243_v41 = vpop.f32.mrf.mxu1 }
 0x1af   :  { %v244_v42 = vadd.f32 %v361_v40, %v243_v41 }
 0x1b0   :  { %v438_v43 = vpop.f32.mrf.mxu1 }
 0x1b1   :  { %v247_v44 = vmax.f32 %v244_v42, 0.0 }
 0x1b3   :  { %472 = vmatmul.mubr.f32.vlgmr.msra.gmra.mxu0 %v247_v44 }
 0x273   :  { %v337_v46 = vpop.f32.mrf.mxu0 }
 0x274   :  { %v338_v47 = vadd.f32 %v362_v45, %v337_v46 }
 0x275   :  { %v473_v48 = vpop.f32.mrf.mxu0 }
 0x276   :  { %341 = vst [vmem:[#allocation8] sm:$0x3] %v338_v47 }
 0x277   :  { %553 = shalt.err (!%p550_p5)
}
 0x278   :  { %351 = dma.vmem_to_hbm [thread:$0]  %s349_s22, 32, %s686_s7, [#allocation4]  }
 0x279   :  { %566 = dma.done.wait [#allocation4], 32  }
 0x27a   :  { %567 = vsyncadd [#allocation4], 4294967264 }
 0x27b   :  { %355 = vsyncpa [#allocation3], 1 }
 0x27c   :  { %356 = vsyncpa [#allocation6], 1 }
 0x27d   :  { %357 = vsyncpa [#allocation4], 1 }

</bundles_post_ra>
